<compile_context>
chip_gen: v5e
topology: v5e:2x2
jax: 0.10.0
libtpu: 0.0.40
codegen_flags: <defaults>
</compile_context>

<pallas_src>
import jax
import jax.numpy as jnp
from jax.experimental import pallas as pl
from jax.experimental.pallas import tpu as pltpu

_LANE = 128
_SUBLANE = 8


def _mlp_kernel(x_ref, w1_ref, b1_ref, w2_ref, b2_ref, o_ref):
    # Layer 1: Linear(D_in -> H) on the MXU, f32 accumulation.
    h = jnp.dot(x_ref[...], w1_ref[...], preferred_element_type=jnp.float32)
    # Bias + ReLU in f32 on the VPU (b1 is (1, H) -> broadcasts over rows).
    h = jnp.maximum(h + b1_ref[...], 0.0)
    # Layer 2: Linear(H -> D_pad) on the MXU (D_pad is the lane-padded width).
    out = jnp.dot(h, w2_ref[...], preferred_element_type=jnp.float32)
    o_ref[...] = (out + b2_ref[...]).astype(o_ref.dtype)


def custom_model_forward(x, w1, b1, w2, b2, *, block_b=512):
    """Fused Linear->ReLU->Linear forward pass.

    x:  [B, D_in]   float32
    w1: [D_in, H]   float32
    b1: [1, H]      float32
    w2: [H, D_out]  float32
    b2: [1, D_out]  float32
    returns [B, D_out] float32
    """
    B, D_in = x.shape
    H = w1.shape[1]
    D_out = w2.shape[1]

    # --- Lane-dense output: pad the final feature dim to a multiple of 128 so
    # the output store is an unmasked full-lane vst.  Extra columns are zero
    # (zero weight columns + zero bias) and sliced off below.
    D_pad = ((D_out + _LANE - 1) // _LANE) * _LANE
    if D_pad != D_out:
        w2 = jnp.pad(w2, ((0, 0), (0, D_pad - D_out)))
        b2 = jnp.pad(b2, ((0, 0), (0, D_pad - D_out)))

    # Batch tile (multiple of the 8-row sublane granularity).
    TB = max(_SUBLANE, (block_b // _SUBLANE) * _SUBLANE)

    if B <= TB:
        # ---------------- Tiny-batch path: no grid at all. ----------------
        # Everything (x, weights, output) lives in VMEM for a single kernel
        # invocation; no pipelining scaffolding, no double buffers.
        out = pl.pallas_call(
            _mlp_kernel,
            out_shape=jax.ShapeDtypeStruct((B, D_pad), x.dtype),
            in_specs=[pl.BlockSpec(memory_space=pltpu.MemorySpace.VMEM)] * 5,
            out_specs=pl.BlockSpec(memory_space=pltpu.MemorySpace.VMEM),
        )(x, w1, b1, w2, b2)
        return out[:, :D_out]

    # ---------------- Large-batch path: tile over the batch axis. ----------
    B_pad = ((B + TB - 1) // TB) * TB
    if B_pad != B:
        x = jnp.pad(x, ((0, B_pad - B), (0, 0)))

    grid = (B_pad // TB,)
    out = pl.pallas_call(
        _mlp_kernel,
        out_shape=jax.ShapeDtypeStruct((B_pad, D_pad), x.dtype),
        grid=grid,
        in_specs=[
            # Activations: one (TB, D_in) tile per grid step.
            pl.BlockSpec((TB, D_in), lambda i: (i, 0)),
            # Weights / biases: constant index_map -> VMEM-resident, no
            # re-DMA across grid steps.
            pl.BlockSpec((D_in, H), lambda i: (0, 0)),
            pl.BlockSpec((1, H), lambda i: (0, 0)),
            pl.BlockSpec((H, D_pad), lambda i: (0, 0)),
            pl.BlockSpec((1, D_pad), lambda i: (0, 0)),
        ],
        out_specs=pl.BlockSpec((TB, D_pad), lambda i: (i, 0)),
        compiler_params=pltpu.CompilerParams(
            # Batch tiles are independent -> shard across TensorCores (v7x).
            dimension_semantics=("parallel",),
            # Tiny footprint (< 2 MiB at TB=512); explicit cap stays safely
            # inside v7x's 64 MiB physical VMEM.
            vmem_limit_bytes=16 * 1024 * 1024,
        ),
    )(x, w1, b1, w2, b2)
    return out[:B, :D_out]


def reference_forward(x, w1, b1, w2, b2):
    h = jnp.maximum(x @ w1 + b1, 0.0)
    return h @ w2 + b2


if __name__ == "__main__":
    D_in, H, D_out = 32, 64, 16

    key = jax.random.PRNGKey(0)
    kx, kw1, kb1, kw2, kb2, kx2 = jax.random.split(key, 6)

    # Deterministic parameter init (PyTorch-Linear-like uniform bounds).
    bound1 = 1.0 / (D_in ** 0.5)
    bound2 = 1.0 / (H ** 0.5)
    w1 = jax.random.uniform(kw1, (D_in, H), minval=-bound1, maxval=bound1, dtype=jnp.float32)
    b1 = jax.random.uniform(kb1, (1, H), minval=-bound1, maxval=bound1, dtype=jnp.float32)
    w2 = jax.random.uniform(kw2, (H, D_out), minval=-bound2, maxval=bound2, dtype=jnp.float32)
    b2 = jax.random.uniform(kb2, (1, D_out), minval=-bound2, maxval=bound2, dtype=jnp.float32)

    # --- Small-batch case (grid-less path) ---
    B = 8
    x = jax.random.normal(kx, (B, D_in), dtype=jnp.float32)
    out = jax.block_until_ready(custom_model_forward(x, w1, b1, w2, b2))
    ref = reference_forward(x, w1, b1, w2, b2)
    assert out.shape == (B, D_out)
    assert jnp.allclose(out, ref, atol=1e-5, rtol=1e-5)

    # --- Larger batch (batch-tiled path, non-multiple of the tile) ---
    B2 = 1030
    x2 = jax.random.normal(kx2, (B2, D_in), dtype=jnp.float32)
    out2 = jax.block_until_ready(custom_model_forward(x2, w1, b1, w2, b2, block_b=512))
    ref2 = reference_forward(x2, w1, b1, w2, b2)
    assert out2.shape == (B2, D_out)
    assert jnp.allclose(out2, ref2, atol=1e-4, rtol=1e-5)

    print("KERNEL_OK")
</pallas_src>

<mosaic_0001>
module attributes {stable_mosaic.version = 11 : i64} {
  func.func @_mlp_kernel(%arg0: memref<8x32xf32, #tpu.memory_space<vmem>>, %arg1: memref<32x64xf32, #tpu.memory_space<vmem>>, %arg2: memref<1x64xf32, #tpu.memory_space<vmem>>, %arg3: memref<64x128xf32, #tpu.memory_space<vmem>>, %arg4: memref<1x128xf32, #tpu.memory_space<vmem>>, %arg5: memref<8x128xf32, #tpu.memory_space<vmem>>) attributes {dimension_semantics = [], scalar_prefetch = 0 : i64, scratch_operands = 0 : i64, tpu.core_type = #tpu.core_type<tc>} {
    %c0 = arith.constant 0 : index
    %c0_0 = arith.constant 0 : index
    %0 = vector.load %arg0[%c0, %c0_0] : memref<8x32xf32, #tpu.memory_space<vmem>>, vector<8x32xf32>
    %c0_1 = arith.constant 0 : index
    %c0_2 = arith.constant 0 : index
    %1 = vector.load %arg1[%c0_1, %c0_2] : memref<32x64xf32, #tpu.memory_space<vmem>>, vector<32x64xf32>
    %cst = arith.constant dense<0.000000e+00> : vector<8x64xf32>
    %2 = tpu.matmul %0, %1, %cst {dimension_numbers = #tpu.dot_dimension_numbers<[1], [0], [0], [1], [0, 0, 1, 1], [], []>} : vector<8x32xf32>, vector<32x64xf32>, vector<8x64xf32> -> vector<8x64xf32>
    %c0_3 = arith.constant 0 : index
    %c0_4 = arith.constant 0 : index
    %3 = vector.load %arg2[%c0_3, %c0_4] : memref<1x64xf32, #tpu.memory_space<vmem>>, vector<1x64xf32>
    %4 = vector.broadcast %3 : vector<1x64xf32> to vector<8x64xf32>
    %5 = arith.addf %2, %4 : vector<8x64xf32>
    %cst_5 = arith.constant 0.000000e+00 : f32
    %6 = vector.broadcast %cst_5 : f32 to vector<8x64xf32>
    %7 = arith.maximumf %5, %6 : vector<8x64xf32>
    %c0_6 = arith.constant 0 : index
    %c0_7 = arith.constant 0 : index
    %8 = vector.load %arg3[%c0_6, %c0_7] : memref<64x128xf32, #tpu.memory_space<vmem>>, vector<64x128xf32>
    %cst_8 = arith.constant dense<0.000000e+00> : vector<8x128xf32>
    %9 = tpu.matmul %7, %8, %cst_8 {dimension_numbers = #tpu.dot_dimension_numbers<[1], [0], [0], [1], [0, 0, 1, 1], [], []>} : vector<8x64xf32>, vector<64x128xf32>, vector<8x128xf32> -> vector<8x128xf32>
    %c0_9 = arith.constant 0 : index
    %c0_10 = arith.constant 0 : index
    %10 = vector.load %arg4[%c0_9, %c0_10] : memref<1x128xf32, #tpu.memory_space<vmem>>, vector<1x128xf32>
    %11 = vector.broadcast %10 : vector<1x128xf32> to vector<8x128xf32>
    %12 = arith.addf %9, %11 : vector<8x128xf32>
    %c0_11 = arith.constant 0 : index
    %c0_12 = arith.constant 0 : index
    %13 = vector.load %arg5[%c0_11, %c0_12] : memref<8x128xf32, #tpu.memory_space<vmem>>, vector<8x128xf32>
    tpu.vector_store %arg5[%c0_11, %c0_12], %12 {strides = array<i32>} : memref<8x128xf32, #tpu.memory_space<vmem>>, vector<8x128xf32>,
    return
  }
}

</mosaic_0001>

<bundles_post_ra>
// kernel: tpu_custom_call.1
= control target key start
LH: loop header
LB: loop body
LE: loop exit
PB: predicated region body
PF: predicated region fallthrough
CT: control target
= control target key end

     0   :  { %10 = vsyncpa [#allocation3], 0  ;;  %s321_s0 = inlined_call_operand.hbm [shape: f32[8,32], index: 0, kind: input, shape index: {}]   ;;  %s322_s1 = inlined_call_operand.hbm [shape: f32[32,64], index: 1, kind: input, shape index: {}]   ;;  %s323_s2 = inlined_call_operand.vmem [shape: f32[1,64], index: 2, kind: input, shape index: {}]   ;;  %s324_s3 = inlined_call_operand.hbm [shape: f32[64,128], index: 3, kind: input, shape index: {}]   ;;  %s325_s4 = inlined_call_operand.vmem [shape: f32[1,128], index: 4, kind: input, shape index: {}]   ;;  %s326_s5 = inlined_call_operand.hbm [shape: f32[8,128], index: 5, kind: output, shape index: {}]  }
   0x1   :  { %11 = vsyncpa [#allocation6], 0  ;;  %s28_s20 = sshll.u32 %s322_s1, 4  ;;  %s29_s20 = int_to_ptr.hbm [resolvable:$true] %s28_s20 }
   0x2   :  { %12 = vsyncpa [#allocation4], 0  ;;  %s267_s21 = smov [#allocation5]   ;;  %s18_s25 = sshll.u32 %s321_s0, 4  ;;  %s19_s25 = int_to_ptr.hbm [resolvable:$true] %s18_s25 }
   0x3   :  { %s30_s22 = sshll.u32 %s267_s21, 4  ;;  %s268_s26 = smov 128   ;;  %s31_s22 = int_to_ptr.vmem [resolvable:$true] %s30_s22 }
   0x4   :  { %s269_s27 = smov 8   ;;  %s270_s28 = smov [#allocation2]  }
   0x5   :  { %36 = dma.hbm_to_vmem [thread:$0]  %s29_s20, 512, %s31_s22, [#allocation6], %s268_s26, %s268_s26, %s269_s27  }
   0x6   :  { %s20_s29 = sshll.u32 %s270_s28, 4  ;;  %s43_s7 = sshll.u32 %s324_s3, 4  ;;  %s21_s29 = int_to_ptr.vmem [resolvable:$true] %s20_s29  ;;  %s44_s7 = int_to_ptr.hbm [resolvable:$true] %s43_s7 }
   0x7   :  { %23 = dma.hbm_to_vmem [thread:$0]  %s19_s25, 128, %s21_s29, [#allocation3]  }
   0x8   :  { %s271_s1 = smov [#allocation7]  }
   0x9   :  { %s45_s8 = sshll.u32 %s271_s1, 4  ;;  %s46_s8 = int_to_ptr.vmem [resolvable:$true] %s45_s8 }
   0xa   :  { %51 = dma.hbm_to_vmem [thread:$0]  %s44_s7, 1024, %s46_s8, [#allocation6], %s268_s26, %s268_s26, %s269_s27  }
   0xb   :  { %261 = dma.done.wait [#allocation3], 128  }
   0xc   :  { %262 = vsyncadd [#allocation3], 4294967168 }
   0xd   :  { %263 = dma.done.wait [#allocation6], 1536  }
   0xe   :  { %264 = vsyncadd [#allocation6], 4294965760  ;;  %v70_v0 = vld [vmem:[#allocation5 + $0x18] sm:$0xff]  ;;  %v69_v1 = vld [vmem:[#allocation5 + $0x10] sm:$0xff]  ;;  %vm75_vm0 = vcmask 261120   ;;  %vm112_vm1 = vcmask 523264  }
   0xf   :  { %91 = vmatpush.msra.mxu0 %v70_v0  ;;  %v107_v2 = vld [vmem:[#allocation7 + $0x38] sm:$0xff]  ;;  %v68_v3 = vld [vmem:[#allocation5 + $0x8] sm:$0xff]  ;;  %v106_v4 = vld [vmem:[#allocation7 + $0x30] sm:$0xff]  ;;  %s272_s11 = smov [#allocation8]   ;;  %s144_s15 = sshll.u32 %s326_s5, 4  ;;  %s145_s15 = int_to_ptr.hbm [resolvable:$true] %s144_s15 }
  0x10   :  { %124 = vmatpush.msra.mxu1 %v107_v2  ;;  %v105_v5 = vld [vmem:[#allocation7 + $0x28] sm:$0xff]  ;;  %v67_v6 = vld [vmem:[#allocation5] sm:$0xff]  ;;  %v66_v7 = vld [vmem:[#allocation2] sm:$0xff]  ;;  %s142_s12 = sshll.u32 %s272_s11, 4  ;;  %s143_s12 = int_to_ptr.vmem [resolvable:$true] %s142_s12 }
  0x11   :  { %92 = vmatpush.msra.mxu0 %v69_v1  ;;  %v104_v8 = vld [vmem:[#allocation7 + $0x20] sm:$0xff]  ;;  %v103_v9 = vld [vmem:[#allocation7 + $0x18] sm:$0xff]  ;;  %v102_v10 = vld [vmem:[#allocation7 + $0x10] sm:$0xff] }
  0x12   :  { %125 = vmatpush.msra.mxu1 %v106_v4  ;;  %v101_v11 = vld [vmem:[#allocation7 + $0x8] sm:$0xff]  ;;  %v100_v12 = vld [vmem:[#allocation7] sm:$0xff]  ;;  %v163_v13 = vld [vmem:[%s323_s2] ss:$0 sm:$0xff] }
  0x13   :  { %93 = vmatpush.msra.mxu0 %v68_v3  ;;  %v164_v17 = vld [vmem:[%s325_s4] ss:$0 sm:$0xff] }
  0x14   :  { %126 = vmatpush.msra.mxu1 %v105_v5 }
  0x15   :  { %94 = vmatpush.msra.mxu0 %v67_v6 }
  0x16   :  { %155 = vmatmul.msk.f32.vlgmr.msra.gmra.mxu0 %vm75_vm0, %v66_v7  ;;  %127 = vmatpush.msra.mxu1 %v104_v8 }
  0x18   :  { %128 = vmatpush.msra.mxu1 %v103_v9 }
  0x1a   :  { %129 = vmatpush.msra.mxu1 %v102_v10 }
  0x1c   :  { %130 = vmatpush.msra.mxu1 %v101_v11 }
  0x1e   :  { %131 = vmatpush.msra.mxu1 %v100_v12 }
  0x93   :  { %v96_v14 = vpop.f32.mrf.mxu0 }
  0x94   :  { %v97_v15 = vadd.f32 %v163_v13, %v96_v14 }
  0x96   :  { %v99_v16 = vmax.f32 %v97_v15, 0.0 }
  0x98   :  { %156 = vmatmul.msk.f32.vlgmr.msra.gmra.mxu1 %vm112_vm1, %v99_v16 }
 0x115   :  { %v133_v18 = vpop.f32.mrf.mxu1 }
 0x116   :  { %v134_v19 = vadd.f32 %v164_v17, %v133_v18 }
 0x118   :  { %136 = vst [vmem:[#allocation8] sm:$0xff] %v134_v19 }
 0x119   :  { %147 = dma.vmem_to_hbm [thread:$0]  %s143_s12, 128, %s145_s15, [#allocation4]  }
 0x11a   :  { %265 = dma.done.wait [#allocation4], 128  }
 0x11b   :  { %266 = vsyncadd [#allocation4], 4294967168 }
 0x11c   :  { %152 = vsyncpa [#allocation3], 1 }
 0x11d   :  { %153 = vsyncpa [#allocation6], 1 }
 0x11e   :  { %154 = vsyncpa [#allocation4], 1 }

</bundles_post_ra>
